<compile_context>
chip_gen: v7x
topology: tpu7x:2x2x1
jax: 0.10.0
libtpu: 0.0.40
codegen_flags: <defaults>
</compile_context>

<pallas_src>
import jax
import jax.numpy as jnp
from jax.experimental import pallas as pl
from jax.experimental.pallas import tpu as pltpu


def _discriminator_kernel(x_ref, w_ref, b_ref, o_ref):
    # x_ref: (TB, IN) VMEM | w_ref: (IN, 1) VMEM | b_ref: (1, 1) SMEM | o_ref: (TB, 1)
    logits = jnp.dot(x_ref[...], w_ref[...],
                     preferred_element_type=jnp.float32)   # MXU, (TB, 1) f32
    logits = logits + b_ref[0, 0]                           # SMEM scalar broadcast
    o_ref[...] = jax.nn.sigmoid(logits).astype(o_ref.dtype)


def _round_up(x, m):
    return ((x + m - 1) // m) * m


# Max rows per tile: 8192 * 512 B/row (50 lanes pad to 128, f32) = 4 MiB/buffer,
# 8 MiB double-buffered -> fits v5e's 16 MiB default scoped VMEM with headroom,
# and trivially fits v6e (32 MiB scoped / 128 MiB phys) and v7x (32 / 64 MiB).
_MAX_TB = 8192


def _choose_tile(B):
    if B <= _MAX_TB:
        if B >= 2048:
            # Split into (at least) two tiles so v7x's two TensorCores both get
            # work; harmless on v5e/v6e (one extra cheap grid step).
            return _round_up(pl.cdiv(B, 2), 8)
        return _round_up(B, 8)
    n = pl.cdiv(B, _MAX_TB)
    if n % 2 == 1:
        n += 1  # even grid length splits evenly across v7x's two TCs
    return _round_up(pl.cdiv(B, n), 8)


def domain_discriminator(x, weight, bias, *, block_b=None):
    """x: [B, 50] f32; weight: [1, 50] f32 (PyTorch layout); bias: [1] f32 -> [B, 1]."""
    B, in_f = x.shape
    out_f, in_f_w = weight.shape
    assert in_f == in_f_w and out_f == 1

    if block_b is None:
        tb = _choose_tile(B)
    else:
        tb = _round_up(min(block_b, B), 8)
    grid = pl.cdiv(B, tb)

    w_col = weight.T.astype(jnp.float32)               # (IN, 1) column, 200 B transpose once
    b_smem = bias.reshape(1, 1).astype(jnp.float32)    # (1, 1) SMEM scalar

    out = pl.pallas_call(
        _discriminator_kernel,
        out_shape=jax.ShapeDtypeStruct((B, out_f), jnp.float32),
        grid_spec=pl.GridSpec(
            grid=(grid,),
            in_specs=[
                pl.BlockSpec((tb, in_f), lambda i: (i, 0)),          # x: tiled over batch
                pl.BlockSpec((in_f, out_f), lambda i: (0, 0)),       # weight column: resident
                pl.BlockSpec(memory_space=pltpu.MemorySpace.SMEM),   # bias scalar in SMEM
            ],
            out_specs=pl.BlockSpec((tb, out_f), lambda i: (i, 0)),
        ),
        compiler_params=pltpu.CompilerParams(
            dimension_semantics=("parallel",),
        ),
    )(x.astype(jnp.float32), w_col, b_smem)

    return out


if __name__ == "__main__":
    key = jax.random.PRNGKey(0)
    kx, kw, kb = jax.random.split(key, 3)

    B, IN_F, OUT_F = 8, 50, 1

    # Deterministic parameter init (same shapes as nn.Linear(50, 1)).
    x = jax.random.normal(kx, (B, IN_F), dtype=jnp.float32)
    weight = jax.random.normal(kw, (OUT_F, IN_F), dtype=jnp.float32) * 0.1
    bias = jax.random.normal(kb, (OUT_F,), dtype=jnp.float32) * 0.1

    out = domain_discriminator(x, weight, bias)
    jax.block_until_ready(out)

    # Pure-JAX reference check.
    ref = jax.nn.sigmoid(x @ weight.T + bias)
    assert out.shape == (B, OUT_F)
    assert jnp.allclose(out, ref, atol=1e-5, rtol=1e-5), "mismatch vs reference"

    # Multi-tile path with an explicit tile and a ragged last block (no jnp.pad).
    B2 = 600
    x2 = jax.random.normal(kx, (B2, IN_F), dtype=jnp.float32)
    out2 = domain_discriminator(x2, weight, bias, block_b=256)
    jax.block_until_ready(out2)
    ref2 = jax.nn.sigmoid(x2 @ weight.T + bias)
    assert out2.shape == (B2, OUT_F)
    assert jnp.allclose(out2, ref2, atol=1e-5, rtol=1e-5), "mismatch vs reference (tiled)"

    # Auto-tiled path: even grid split + ragged boundary block.
    B3 = 3000
    x3 = jax.random.normal(kb, (B3, IN_F), dtype=jnp.float32)
    out3 = domain_discriminator(x3, weight, bias)
    jax.block_until_ready(out3)
    ref3 = jax.nn.sigmoid(x3 @ weight.T + bias)
    assert out3.shape == (B3, OUT_F)
    assert jnp.allclose(out3, ref3, atol=1e-5, rtol=1e-5), "mismatch vs reference (auto)"

    print("KERNEL_OK")
</pallas_src>

<mosaic_0001>
module attributes {stable_mosaic.version = 11 : i64} {
  func.func @_discriminator_kernel(%arg0: i32, %arg1: memref<8x50xf32, #tpu.memory_space<vmem>>, %arg2: memref<50x1xf32, #tpu.memory_space<vmem>>, %arg3: memref<1x1xf32, #tpu.memory_space<smem>>, %arg4: memref<8x1xf32, #tpu.memory_space<vmem>>) attributes {dimension_semantics = [#tpu.dimension_semantics<parallel>], iteration_bounds = array<i64: 1>, scalar_prefetch = 0 : i64, scratch_operands = 0 : i64, tpu.core_type = #tpu.core_type<tc>, window_params = [{transform_indices = @transform_0, window_bounds = array<i64: 8, 50>}, {pipeline_mode = #tpu.pipeline_mode<synchronous>, transform_indices = @transform_1, window_bounds = array<i64: 50, 1>}, {transform_indices = @transform_2, window_bounds = array<i64: 1, 1>}, {transform_indices = @transform_3, window_bounds = array<i64: 8, 1>}]} {
    %c0 = arith.constant 0 : index
    %c0_0 = arith.constant 0 : index
    %0 = vector.load %arg1[%c0, %c0_0] : memref<8x50xf32, #tpu.memory_space<vmem>>, vector<8x50xf32>
    %c0_1 = arith.constant 0 : index
    %c0_2 = arith.constant 0 : index
    %1 = vector.load %arg2[%c0_1, %c0_2] : memref<50x1xf32, #tpu.memory_space<vmem>>, vector<50x1xf32>
    %cst = arith.constant dense<0.000000e+00> : vector<8x1xf32>
    %2 = tpu.matmul %0, %1, %cst {dimension_numbers = #tpu.dot_dimension_numbers<[1], [0], [0], [1], [0, 0, 1, 1], [], []>} : vector<8x50xf32>, vector<50x1xf32>, vector<8x1xf32> -> vector<8x1xf32>
    %c0_3 = arith.constant 0 : index
    %c0_4 = arith.constant 0 : index
    %3 = memref.load %arg3[%c0_3, %c0_4] : memref<1x1xf32, #tpu.memory_space<smem>>
    %4 = vector.broadcast %3 : f32 to vector<8x1xf32>
    %5 = arith.addf %2, %4 : vector<8x1xf32>
    %6 = arith.negf %5 : vector<8x1xf32>
    %7 = math.exp %6 : vector<8x1xf32>
    %cst_5 = arith.constant 1.000000e+00 : f32
    %8 = vector.broadcast %cst_5 : f32 to vector<8x1xf32>
    %9 = arith.addf %8, %7 : vector<8x1xf32>
    %10 = arith.divf %8, %9 : vector<8x1xf32>
    %c0_6 = arith.constant 0 : index
    %c0_7 = arith.constant 0 : index
    %11 = vector.load %arg4[%c0_6, %c0_7] : memref<8x1xf32, #tpu.memory_space<vmem>>, vector<8x1xf32>
    tpu.vector_store %arg4[%c0_6, %c0_7], %10 {strides = array<i32>} : memref<8x1xf32, #tpu.memory_space<vmem>>, vector<8x1xf32>,
    return
  }
  func.func @transform_0(%arg0: i32) -> (i32, i32) {
    %c0_i32 = arith.constant 0 : i32
    %c0_i32_0 = arith.constant 0 : i32
    return %arg0, %c0_i32 : i32, i32
  }
  func.func @transform_1(%arg0: i32) -> (i32, i32) {
    %c0_i32 = arith.constant 0 : i32
    %c0_i32_0 = arith.constant 0 : i32
    %c0_i32_1 = arith.constant 0 : i32
    return %c0_i32, %c0_i32_0 : i32, i32
  }
  func.func @transform_2(%arg0: i32) -> (i32, i32) {
    %c0_i32 = arith.constant 0 : i32
    %c0_i32_0 = arith.constant 0 : i32
    %c0_i32_1 = arith.constant 0 : i32
    return %c0_i32, %c0_i32_0 : i32, i32
  }
  func.func @transform_3(%arg0: i32) -> (i32, i32) {
    %c0_i32 = arith.constant 0 : i32
    %c0_i32_0 = arith.constant 0 : i32
    return %arg0, %c0_i32 : i32, i32
  }
}

</mosaic_0001>

<bundles_post_ra>
// kernel: tpu_custom_call.1
= control target key start
LH: loop header
LB: loop body
LE: loop exit
PB: predicated region body
PF: predicated region fallthrough
CT: control target
= control target key end

     0   :  { %v159_v0 = vmov 0.0|0.0   ;;  %vm160_vm0 = vmmov 0   ;;  %v161_v4 = vmov 0.0   ;;  %vm29_vm1 = vcmask 1041408   ;;  %s212_s1 = inlined_call_operand.vmem [shape: f32[50,1], index: 1, kind: input, shape index: {}]   ;;  %s213_s0 = inlined_call_operand.vmem [shape: f32[8,50], index: 0, kind: input, shape index: {}]   ;;  %s214_s2 = inlined_call_operand.<no memory space> [shape: f32[1,1], index: 2, kind: input, shape index: {}]   ;;  %s215_s3 = inlined_call_operand.vmem [shape: f32[8,1], index: 3, kind: output, shape index: {}]  }
   0x1   :  { %143 = vmatprep.subr.bf16.mxu0 %v159_v0  ;;  %v16_v1 = vld [vmem:[%s212_s1] sm:$0xff]  ;;  %v17_v2 = vld [vmem:[%s212_s1 + $0x8] sm:$0xff]  ;;  %v18_v3 = vld [vmem:[%s212_s1 + $0x10] sm:$0xff]  ;;  %140 = vmatprep.mubr.msk.f32.mxu0 %vm160_vm0, %v161_v4  ;;  %vm25_vm2 = vcmask 408576   ;;  %v24_v13 = vstv %s214_s2  ;;  %vm109_vm3 = vcmask 7168  }
   0x2   :  { %v144_v5 = vpack.c.bf16 %v17_v2, %v16_v1  ;;  %v19_v6 = vld [vmem:[%s212_s1 + $0x18] sm:$0xff]  ;;  %v20_v8 = vld [vmem:[%s212_s1 + $0x20] sm:$0xff]  ;;  %v21_v9 = vld [vmem:[%s212_s1 + $0x28] sm:$0xff] }
   0x3   :  { %v147_v7 = vpack.c.bf16 %v19_v6, %v18_v3  ;;  %v150_v10 = vpack.c.bf16 %v21_v9, %v20_v8  ;;  %v22_v11 = vld [vmem:[%s212_s1 + $0x30] sm:$0x3]  ;;  %v15_v12 = vld [vmem:[%s213_s0] sm:$0xff] }
   0x4   :  { %145 = vmatpush3.bf16.msra.mxu0 %v144_v5 }
   0x5   :  { %146 = vmatprep.subr.bf16.mxu0 %v159_v0 }
   0x8   :  { %148 = vmatpush3.bf16.msra.mxu0 %v147_v7 }
   0x9   :  { %149 = vmatprep.subr.bf16.mxu0 %v159_v0 }
   0xc   :  { %151 = vmatpush3.bf16.msra.mxu0 %v150_v10 }
   0xd   :  { %138 = vmatprep.subr.mxu0 %v161_v4 }
  0x10   :  { %139 = vmatpush3.msk.msra.mxu0 %vm29_vm1, %v22_v11 }
  0x11   :  { %141 = vmatmul.mubr.msk.f32.vlgmr.msra.gmra.mrb[0].mxu0 %vm25_vm2, %v15_v12 }
  0xe4   :  { %v99_v14 = vpop.f32.mrb[0].mxu0 }
  0xe5   :  { %v100_v15 = vadd.f32 %v99_v14, %v24_v13  ;;  %v142_v16 = vpop.f32.mrb[1].mxu0 }
  0xe7   :  { %v117_v17 = vmul.f32 -1.442695, %v100_v15 }
  0xe9   :  { %155 = vpow2.f32 %v117_v17 }
  0xf3   :  { %v156_v18 = vpop.eup %155 }
  0xf4   :  { %v106_v19 = vadd.f32 1.0, %v156_v18 }
  0xf6   :  { %157 = vrcp.f32 %v106_v19 }
 0x100   :  { %v158_v20 = vpop.eup %157 }
 0x101   :  { %110 = vst.msk [vmem:[%s215_s3] sm:$0xff] %vm109_vm3, %v158_v20 }

</bundles_post_ra>
